<compile_context>
chip_gen: v5e
topology: v5e:2x2
jax: 0.10.0
libtpu: 0.0.40
codegen_flags: <defaults>
</compile_context>

<pallas_src>
import functools

import jax
import jax.numpy as jnp
from jax import lax
from jax.experimental import pallas as pl
from jax.experimental.pallas import tpu as pltpu

LANE = 128
MAX_ROW_TILE = 4096   # 4096*128*4B = 2 MiB per f32 input per pipeline buffer
NUM_CORES = 2         # leading "parallel" axis; engages both v7x TCs, harmless elsewhere


def _ssd_kernel(a_ref, b_ref, o_ref, *, rows, row_tile, inner_tiles, n_full_tiles):
    """Accumulates sum((clip(a,0,1)-clip(b,0,1))^2) per core into o_ref (1,8,128)."""
    c = pl.program_id(0)
    t = pl.program_id(1)

    @pl.when(t == 0)
    def _init():
        o_ref[...] = jnp.zeros_like(o_ref)

    g = c * inner_tiles + t  # global (un-clamped) tile index

    def tile_partial(mask_rows):
        # Entire computation is (re)traced inside each pl.when branch so no
        # (row_tile, 128) value is live across scf.if region boundaries.
        a = jnp.clip(a_ref[...].astype(jnp.float32), 0.0, 1.0)
        b = jnp.clip(b_ref[...].astype(jnp.float32), 0.0, 1.0)
        d = a - b
        if mask_rows:
            # Rows of this tile that are real data; <=0 for clamped-duplicate
            # tiles (everything masked), partial for the ragged last tile.
            valid = rows - g * row_tile
            row = lax.broadcasted_iota(jnp.int32, (row_tile, LANE), 0)
            d = jnp.where(row < valid, d, 0.0)
        sq = d * d
        # (row_tile,128)->(row_tile/8,8,128): native (8,128) tile structure, so
        # the reshape is free and the reduce is pure vreg-wise VPU adds.
        return sq.reshape(-1, 8, LANE).sum(axis=0)

    # Hot path: tile fully inside the image -> no masking at all.
    @pl.when(g < n_full_tiles)
    def _full():
        o_ref[...] += tile_partial(mask_rows=False)[None]

    # Tail path: ragged last tile, or clamped-duplicate tile on the other core.
    @pl.when(g >= n_full_tiles)
    def _tail():
        o_ref[...] += tile_partial(mask_rows=True)[None]


def _ssd_small(a, b):
    """Plain-jnp sum of squared clipped diffs (tails / tiny inputs)."""
    a = jnp.clip(a.astype(jnp.float32), 0.0, 1.0)
    b = jnp.clip(b.astype(jnp.float32), 0.0, 1.0)
    d = a - b
    return jnp.sum(d * d)


def _ssd_pallas(a2, b2, rows):
    """Sum of squared clipped diffs over a (rows, 128) view via the Pallas kernel."""
    # Tile rows: big for throughput, multiple of 8, never larger than the array
    # (so we never rely on reading past the array for small inputs).
    row_tile = min(MAX_ROW_TILE, (rows // 8) * 8)
    n_tiles = (rows + row_tile - 1) // row_tile
    n_full_tiles = rows // row_tile
    num_cores = min(NUM_CORES, n_tiles)          # no duplicate DMA for 1-tile inputs
    inner_tiles = (n_tiles + num_cores - 1) // num_cores
    grid = (num_cores, inner_tiles)

    def in_map(c, t):
        # Clamp so the DMA never targets a block fully past the array; such
        # duplicate tiles are masked to zero in-kernel (valid <= 0).
        return (jnp.minimum(c * inner_tiles + t, n_tiles - 1), 0)

    kernel = functools.partial(
        _ssd_kernel, rows=rows, row_tile=row_tile,
        inner_tiles=inner_tiles, n_full_tiles=n_full_tiles)

    partials = pl.pallas_call(
        kernel,
        out_shape=jax.ShapeDtypeStruct((num_cores, 8, LANE), jnp.float32),
        grid_spec=pltpu.PrefetchScalarGridSpec(
            num_scalar_prefetch=0,
            grid=grid,
            in_specs=[
                pl.BlockSpec((row_tile, LANE), in_map),
                pl.BlockSpec((row_tile, LANE), in_map),
            ],
            out_specs=pl.BlockSpec((1, 8, LANE), lambda c, t: (c, 0, 0)),
        ),
        compiler_params=pltpu.CompilerParams(
            dimension_semantics=("parallel", "arbitrary"),
        ),
    )(a2, b2)

    # Single cross-lane reduce + cross-core combine, done once in XLA.
    return jnp.sum(partials)


def psnr_t(img1, img2):
    """PSNR between two images (any shape, typically NCHW), PIXEL_MAX = 1."""
    assert img1.shape == img2.shape
    a = img1.reshape(-1)
    b = img2.reshape(-1)
    total = a.shape[0]
    rows = total // LANE
    main = rows * LANE

    if rows < 8:
        # Tiny input: everything fits in a handful of vregs; kernel not worth it.
        ssd = _ssd_small(a, b)
    elif main == total:
        # Common case: free bitcast view, zero extra HBM passes.
        ssd = _ssd_pallas(a.reshape(rows, LANE), b.reshape(rows, LANE), rows)
    else:
        # TODO(synk): the prefix slice below materializes one copy of each input
        # (XLA cannot alias a sliced operand into the Pallas custom call); a
        # manual-DMA (memory_space=pl.ANY) 1-D variant would avoid even that.
        a2 = a[:main].reshape(rows, LANE)
        b2 = b[:main].reshape(rows, LANE)
        ssd = _ssd_pallas(a2, b2, rows) + _ssd_small(a[main:], b[main:])

    mse = ssd / jnp.float32(total)
    safe_mse = jnp.where(mse == 0.0, jnp.float32(1.0), mse)
    psnr = jnp.where(mse == 0.0, jnp.float32(100.0),
                     20.0 * jnp.log10(1.0 / jnp.sqrt(safe_mse)))
    return psnr


def psnr_ref(img1, img2):
    """Faithful jnp transcription of PSNR_t.forward (inter=True)."""
    a = jnp.clip(img1 * 255.0, 0.0, 255.0) / 255.0
    b = jnp.clip(img2 * 255.0, 0.0, 255.0) / 255.0
    mse = jnp.mean((a - b) ** 2)
    return jnp.where(mse == 0.0, 100.0, 20.0 * jnp.log10(1.0 / jnp.sqrt(mse)))


if __name__ == "__main__":
    # PSNR_t has no learnable parameters -> nothing to initialize.
    key = jax.random.PRNGKey(0)
    k1, k2, k3, k4 = jax.random.split(key, 4)

    # NCHW inputs, values roughly in [0, 1] with a little out-of-range spill to
    # exercise the clip path.  2*4*16*16 = 2048 elements (multiple of 128).
    x1 = jax.random.uniform(k1, (2, 4, 16, 16), jnp.float32, minval=-0.1, maxval=1.1)
    x2 = x1 + 0.05 * jax.random.normal(k2, (2, 4, 16, 16), jnp.float32)

    out = jax.block_until_ready(psnr_t(x1, x2))
    ref = psnr_ref(x1, x2)
    assert jnp.allclose(out, ref, rtol=1e-4, atol=1e-4), (out, ref)

    # Identical-image case exercises the mse == 0 -> 100 branch.
    out_same = jax.block_until_ready(psnr_t(x1, x1))
    assert jnp.allclose(out_same, 100.0), out_same

    # Ragged case: 2*3*17*19 = 1938 elements (not a multiple of 128) exercises
    # the masked last tile, the clamped-duplicate core-1 tile and the jnp tail.
    y1 = jax.random.uniform(k3, (2, 3, 17, 19), jnp.float32, minval=-0.1, maxval=1.1)
    y2 = y1 + 0.03 * jax.random.normal(k4, (2, 3, 17, 19), jnp.float32)
    out2 = jax.block_until_ready(psnr_t(y1, y2))
    ref2 = psnr_ref(y1, y2)
    assert jnp.allclose(out2, ref2, rtol=1e-4, atol=1e-4), (out2, ref2)

    print("KERNEL_OK")
</pallas_src>

<mosaic_0001>
module attributes {stable_mosaic.version = 11 : i64} {
  func.func @_ssd_kernel(%arg0: i32, %arg1: i32, %arg2: memref<16x128xf32, #tpu.memory_space<vmem>>, %arg3: memref<16x128xf32, #tpu.memory_space<vmem>>, %arg4: memref<1x8x128xf32, #tpu.memory_space<vmem>>) attributes {dimension_semantics = [#tpu.dimension_semantics<parallel>, #tpu.dimension_semantics<arbitrary>], iteration_bounds = array<i64: 1, 1>, scalar_prefetch = 0 : i64, scratch_operands = 0 : i64, tpu.core_type = #tpu.core_type<tc>, window_params = [{transform_indices = @transform_0, window_bounds = array<i64: 16, 128>}, {transform_indices = @transform_1, window_bounds = array<i64: 16, 128>}, {transform_indices = @transform_2, window_bounds = array<i64: 1, 8, 128>}]} {
    %c0_i32 = arith.constant 0 : i32
    %0 = arith.cmpi eq, %arg1, %c0_i32 : i32
    %1 = arith.extui %0 : i1 to i32
    %c0_i32_0 = arith.constant 0 : i32
    %2 = arith.cmpi ne, %1, %c0_i32_0 : i32
    scf.if %2 {
      %cst = arith.constant 0.000000e+00 : f32
      %11 = vector.broadcast %cst : f32 to vector<1x8x128xf32>
      %c0 = arith.constant 0 : index
      %c0_5 = arith.constant 0 : index
      %c0_6 = arith.constant 0 : index
      %12 = vector.load %arg4[%c0, %c0_5, %c0_6] : memref<1x8x128xf32, #tpu.memory_space<vmem>>, vector<1x8x128xf32>
      tpu.vector_store %arg4[%c0, %c0_5, %c0_6], %11 {strides = array<i32>} : memref<1x8x128xf32, #tpu.memory_space<vmem>>, vector<1x8x128xf32>,
    } else {
    }
    %c1_i32 = arith.constant 1 : i32
    %3 = arith.muli %arg0, %c1_i32 : i32
    %4 = arith.addi %3, %arg1 : i32
    %c1_i32_1 = arith.constant 1 : i32
    %5 = arith.cmpi slt, %4, %c1_i32_1 : i32
    %6 = arith.extui %5 : i1 to i32
    %c0_i32_2 = arith.constant 0 : i32
    %7 = arith.cmpi ne, %6, %c0_i32_2 : i32
    scf.if %7 {
      %c0 = arith.constant 0 : index
      %c0_5 = arith.constant 0 : index
      %c0_6 = arith.constant 0 : index
      %11 = vector.load %arg4[%c0, %c0_5, %c0_6] : memref<1x8x128xf32, #tpu.memory_space<vmem>>, vector<1x8x128xf32>
      %c0_7 = arith.constant 0 : index
      %c0_8 = arith.constant 0 : index
      %12 = vector.load %arg2[%c0_7, %c0_8] : memref<16x128xf32, #tpu.memory_space<vmem>>, vector<16x128xf32>
      %cst = arith.constant 0.000000e+00 : f32
      %cst_9 = arith.constant 1.000000e+00 : f32
      %13 = vector.broadcast %cst : f32 to vector<16x128xf32>
      %14 = arith.maximumf %13, %12 : vector<16x128xf32>
      %15 = vector.broadcast %cst_9 : f32 to vector<16x128xf32>
      %16 = arith.minimumf %15, %14 : vector<16x128xf32>
      %c0_10 = arith.constant 0 : index
      %c0_11 = arith.constant 0 : index
      %17 = vector.load %arg3[%c0_10, %c0_11] : memref<16x128xf32, #tpu.memory_space<vmem>>, vector<16x128xf32>
      %cst_12 = arith.constant 0.000000e+00 : f32
      %cst_13 = arith.constant 1.000000e+00 : f32
      %18 = vector.broadcast %cst_12 : f32 to vector<16x128xf32>
      %19 = arith.maximumf %18, %17 : vector<16x128xf32>
      %20 = vector.broadcast %cst_13 : f32 to vector<16x128xf32>
      %21 = arith.minimumf %20, %19 : vector<16x128xf32>
      %22 = arith.subf %16, %21 : vector<16x128xf32>
      %23 = arith.mulf %22, %22 : vector<16x128xf32>
      %24 = vector.shape_cast %23 : vector<16x128xf32> to vector<2x8x128xf32>
      %cst_14 = arith.constant dense<0.000000e+00> : vector<8x128xf32>
      %25 = vector.multi_reduction <add>, %24, %cst_14 [0] : vector<2x8x128xf32> to vector<8x128xf32>
      %26 = vector.shape_cast %25 : vector<8x128xf32> to vector<1x8x128xf32>
      %27 = arith.addf %11, %26 : vector<1x8x128xf32>
      %c0_15 = arith.constant 0 : index
      %c0_16 = arith.constant 0 : index
      %c0_17 = arith.constant 0 : index
      %28 = vector.load %arg4[%c0_15, %c0_16, %c0_17] : memref<1x8x128xf32, #tpu.memory_space<vmem>>, vector<1x8x128xf32>
      tpu.vector_store %arg4[%c0_15, %c0_16, %c0_17], %27 {strides = array<i32>} : memref<1x8x128xf32, #tpu.memory_space<vmem>>, vector<1x8x128xf32>,
    } else {
    }
    %c1_i32_3 = arith.constant 1 : i32
    %8 = arith.cmpi sge, %4, %c1_i32_3 : i32
    %9 = arith.extui %8 : i1 to i32
    %c0_i32_4 = arith.constant 0 : i32
    %10 = arith.cmpi ne, %9, %c0_i32_4 : i32
    scf.if %10 {
      %c0 = arith.constant 0 : index
      %c0_5 = arith.constant 0 : index
      %c0_6 = arith.constant 0 : index
      %11 = vector.load %arg4[%c0, %c0_5, %c0_6] : memref<1x8x128xf32, #tpu.memory_space<vmem>>, vector<1x8x128xf32>
      %c0_7 = arith.constant 0 : index
      %c0_8 = arith.constant 0 : index
      %12 = vector.load %arg2[%c0_7, %c0_8] : memref<16x128xf32, #tpu.memory_space<vmem>>, vector<16x128xf32>
      %cst = arith.constant 0.000000e+00 : f32
      %cst_9 = arith.constant 1.000000e+00 : f32
      %13 = vector.broadcast %cst : f32 to vector<16x128xf32>
      %14 = arith.maximumf %13, %12 : vector<16x128xf32>
      %15 = vector.broadcast %cst_9 : f32 to vector<16x128xf32>
      %16 = arith.minimumf %15, %14 : vector<16x128xf32>
      %c0_10 = arith.constant 0 : index
      %c0_11 = arith.constant 0 : index
      %17 = vector.load %arg3[%c0_10, %c0_11] : memref<16x128xf32, #tpu.memory_space<vmem>>, vector<16x128xf32>
      %cst_12 = arith.constant 0.000000e+00 : f32
      %cst_13 = arith.constant 1.000000e+00 : f32
      %18 = vector.broadcast %cst_12 : f32 to vector<16x128xf32>
      %19 = arith.maximumf %18, %17 : vector<16x128xf32>
      %20 = vector.broadcast %cst_13 : f32 to vector<16x128xf32>
      %21 = arith.minimumf %20, %19 : vector<16x128xf32>
      %22 = arith.subf %16, %21 : vector<16x128xf32>
      %c16_i32 = arith.constant 16 : i32
      %23 = arith.muli %4, %c16_i32 : i32
      %c16_i32_14 = arith.constant 16 : i32
      %24 = arith.subi %c16_i32_14, %23 : i32
      %25 = tpu.iota {dimensions = array<i32: 0>} : vector<16x128xi32>
      %26 = vector.broadcast %24 : i32 to vector<16x128xi32>
      %27 = arith.cmpi slt, %25, %26 : vector<16x128xi32>
      %cst_15 = arith.constant 0.000000e+00 : f32
      %28 = vector.broadcast %cst_15 : f32 to vector<16x128xf32>
      %29 = arith.select %27, %22, %28 : vector<16x128xi1>, vector<16x128xf32>
      %30 = arith.mulf %29, %29 : vector<16x128xf32>
      %31 = vector.shape_cast %30 : vector<16x128xf32> to vector<2x8x128xf32>
      %cst_16 = arith.constant dense<0.000000e+00> : vector<8x128xf32>
      %32 = vector.multi_reduction <add>, %31, %cst_16 [0] : vector<2x8x128xf32> to vector<8x128xf32>
      %33 = vector.shape_cast %32 : vector<8x128xf32> to vector<1x8x128xf32>
      %34 = arith.addf %11, %33 : vector<1x8x128xf32>
      %c0_17 = arith.constant 0 : index
      %c0_18 = arith.constant 0 : index
      %c0_19 = arith.constant 0 : index
      %35 = vector.load %arg4[%c0_17, %c0_18, %c0_19] : memref<1x8x128xf32, #tpu.memory_space<vmem>>, vector<1x8x128xf32>
      tpu.vector_store %arg4[%c0_17, %c0_18, %c0_19], %34 {strides = array<i32>} : memref<1x8x128xf32, #tpu.memory_space<vmem>>, vector<1x8x128xf32>,
    } else {
    }
    return
  }
  func.func @transform_0(%arg0: i32, %arg1: i32) -> (i32, i32) {
    %c1_i32 = arith.constant 1 : i32
    %0 = arith.muli %arg0, %c1_i32 : i32
    %1 = arith.addi %0, %arg1 : i32
    %c0_i32 = arith.constant 0 : i32
    %2 = arith.minsi %1, %c0_i32 : i32
    %c0_i32_0 = arith.constant 0 : i32
    %c0_i32_1 = arith.constant 0 : i32
    return %2, %c0_i32_0 : i32, i32
  }
  func.func @transform_1(%arg0: i32, %arg1: i32) -> (i32, i32) {
    %c1_i32 = arith.constant 1 : i32
    %0 = arith.muli %arg0, %c1_i32 : i32
    %1 = arith.addi %0, %arg1 : i32
    %c0_i32 = arith.constant 0 : i32
    %2 = arith.minsi %1, %c0_i32 : i32
    %c0_i32_0 = arith.constant 0 : i32
    %c0_i32_1 = arith.constant 0 : i32
    return %2, %c0_i32_0 : i32, i32
  }
  func.func @transform_2(%arg0: i32, %arg1: i32) -> (i32, i32, i32) {
    %c0_i32 = arith.constant 0 : i32
    %c0_i32_0 = arith.constant 0 : i32
    %c0_i32_1 = arith.constant 0 : i32
    return %arg0, %c0_i32, %c0_i32_0 : i32, i32, i32
  }
}

</mosaic_0001>

<bundles_post_ra>
// kernel: tpu_custom_call.1
= control target key start
LH: loop header
LB: loop body
LE: loop exit
PB: predicated region body
PF: predicated region fallthrough
CT: control target
= control target key end

     0   :  { %7 = vsyncpa [#allocation3], 0  ;;  %s263_s0 = inlined_call_operand.hbm [shape: f32[16,128], index: 0, kind: input, shape index: {}]   ;;  %s264_s1 = inlined_call_operand.hbm [shape: f32[16,128], index: 1, kind: input, shape index: {}]   ;;  %s265_s2 = inlined_call_operand.hbm [shape: f32[1,8,128], index: 2, kind: output, shape index: {}]  }
   0x1   :  { %8 = vsyncpa [#allocation6], 0 }
   0x2   :  { %9 = vsyncpa [#allocation4], 0  ;;  %s20_s11 = sshll.u32 %s263_s0, 4  ;;  %s234_s12 = smov [#allocation2]   ;;  %s21_s11 = int_to_ptr.hbm [resolvable:$true] %s20_s11 }
   0x3   :  { %s22_s13 = sshll.u32 %s234_s12, 4  ;;  %s39_s16 = sshll.u32 %s264_s1, 4  ;;  %s23_s13 = int_to_ptr.vmem [resolvable:$true] %s22_s13  ;;  %s40_s16 = int_to_ptr.hbm [resolvable:$true] %s39_s16 }
   0x4   :  { %s235_s17 = smov 128   ;;  %s236_s18 = smov 8  }
   0x5   :  { %28 = dma.hbm_to_vmem [thread:$0]  %s21_s11, 256, %s23_s13, [#allocation3], %s235_s17, %s235_s17, %s236_s18  }
   0x6   :  { %s237_s19 = smov [#allocation5]  }
   0x7   :  { %s41_s20 = sshll.u32 %s237_s19, 4  ;;  %s42_s20 = int_to_ptr.vmem [resolvable:$true] %s41_s20 }
   0x8   :  { %47 = dma.hbm_to_vmem [thread:$0]  %s40_s16, 256, %s42_s20, [#allocation6], %s235_s17, %s235_s17, %s236_s18  }
   0x9   :  { %228 = dma.done.wait [#allocation3], 256  }
   0xa   :  { %229 = vsyncadd [#allocation3], 4294967040 }
   0xb   :  { %230 = dma.done.wait [#allocation6], 256  }
   0xc   :  { %231 = vsyncadd [#allocation6], 4294967040  ;;  %v75_v0 = vld [vmem:[#allocation2] sm:$0xff]  ;;  %v76_v1 = vld [vmem:[#allocation2 + $0x8] sm:$0xff]  ;;  %s238_s0 = smov [#allocation7]   ;;  %s135_s23 = sshll.u32 %s265_s2, 4  ;;  %s136_s23 = int_to_ptr.hbm [resolvable:$true] %s135_s23 }
   0xd   :  { %v81_v2 = vld [vmem:[#allocation5] sm:$0xff]  ;;  %v77_v3 = vmax.f32 %v75_v0, 0.0  ;;  %v78_v4 = vmax.f32 %v76_v1, 0.0  ;;  %v82_v5 = vld [vmem:[#allocation5 + $0x8] sm:$0xff]  ;;  %s133_s1 = sshll.u32 %s238_s0, 4  ;;  %s134_s1 = int_to_ptr.vmem [resolvable:$true] %s133_s1 }
   0xe   :  { %v83_v6 = vmax.f32 %v81_v2, 0.0  ;;  %v84_v7 = vmax.f32 %v82_v5, 0.0 }
   0xf   :  { %v79_v8 = vmin.f32 %v77_v3, 1.0  ;;  %v80_v9 = vmin.f32 %v78_v4, 1.0 }
  0x10   :  { %v85_v10 = vmin.f32 %v83_v6, 1.0  ;;  %v86_v11 = vmin.f32 %v84_v7, 1.0 }
  0x12   :  { %v87_v12 = vsub.f32 %v79_v8, %v85_v10  ;;  %v88_v13 = vsub.f32 %v80_v9, %v86_v11 }
  0x14   :  { %v89_v14 = vmul.f32 %v87_v12, %v87_v12  ;;  %v90_v15 = vmul.f32 %v88_v13, %v88_v13 }
  0x16   :  { %v91_v16 = vadd.f32 %v90_v15, %v89_v14 }
  0x18   :  { %93 = vst [vmem:[#allocation7] sm:$0xff] %v91_v16 }
  0x19   :  { %138 = dma.vmem_to_hbm [thread:$0]  %s134_s1, 128, %s136_s23, [#allocation4]  }
  0x1a   :  { %232 = dma.done.wait [#allocation4], 128  }
  0x1b   :  { %233 = vsyncadd [#allocation4], 4294967168 }
  0x1c   :  { %143 = vsyncpa [#allocation3], 1 }
  0x1d   :  { %144 = vsyncpa [#allocation6], 1 }
  0x1e   :  { %145 = vsyncpa [#allocation4], 1 }

</bundles_post_ra>
